<compile_context>
chip_gen: v7x
topology: tpu7x:2x2x1
jax: 0.10.0
libtpu: 0.0.40
codegen_flags: <defaults>
</compile_context>

<pallas_src>
import functools

import jax
import jax.numpy as jnp
from jax.experimental import pallas as pl
from jax.experimental.pallas import tpu as pltpu


# --------------------------------------------------------------------------------------------
# Kernels
# --------------------------------------------------------------------------------------------
def _sage_layer_kernel_resident(a_ref, h_ref, ws_ref, wn_ref, b_ref,
                                o_ref, acc_ref, *, apply_relu, tm, tk):
    """H fully VMEM-resident. Grid step (i, k): accumulate A[i,k] @ H[k]; finalize on last k."""
    i = pl.program_id(0)
    k = pl.program_id(1)

    @pl.when(k == 0)
    def _():
        acc_ref[...] = jnp.zeros_like(acc_ref)

    src0 = pl.multiple_of(k * tk, tk)
    acc_ref[...] += jnp.dot(a_ref[...], h_ref[pl.ds(src0, tk), :],
                            preferred_element_type=jnp.float32)

    @pl.when(k == pl.num_programs(1) - 1)
    def _():
        dst0 = pl.multiple_of(i * tm, tm)
        hself = h_ref[pl.ds(dst0, tm), :]
        out = (jnp.dot(hself, ws_ref[...], preferred_element_type=jnp.float32)
               + jnp.dot(acc_ref[...], wn_ref[...].astype(jnp.float32),   # keep agg in f32
                         preferred_element_type=jnp.float32)
               + b_ref[...])
        if apply_relu:
            out = jnp.maximum(out, 0.0)
        o_ref[...] = out.astype(o_ref.dtype)


def _sage_layer_kernel_streamed(a_ref, hsrc_ref, hself_ref, ws_ref, wn_ref, b_ref,
                                o_ref, acc_ref, *, apply_relu):
    """Streamed-H fallback for graphs whose features do not fit VMEM."""
    k = pl.program_id(1)

    @pl.when(k == 0)
    def _():
        acc_ref[...] = jnp.zeros_like(acc_ref)

    acc_ref[...] += jnp.dot(a_ref[...], hsrc_ref[...],
                            preferred_element_type=jnp.float32)

    @pl.when(k == pl.num_programs(1) - 1)
    def _():
        out = (jnp.dot(hself_ref[...], ws_ref[...], preferred_element_type=jnp.float32)
               + jnp.dot(acc_ref[...], wn_ref[...].astype(jnp.float32),   # keep agg in f32
                         preferred_element_type=jnp.float32)
               + b_ref[...])
        if apply_relu:
            out = jnp.maximum(out, 0.0)
        o_ref[...] = out.astype(o_ref.dtype)


# --------------------------------------------------------------------------------------------
# Wrapper
# --------------------------------------------------------------------------------------------
def _vmem_capacity_bytes():
    try:
        return int(pltpu.get_tpu_info().vmem_capacity_bytes)
    except Exception:
        return 64 * 1024 * 1024   # conservative: v7x has the smallest VMEM


def sage_layer(a_norm, h, w_self, w_neigh, bias, *, apply_relu, out_dtype,
               tm=512, tk=256, force_streamed=False):
    n, f = h.shape
    hp = w_self.shape[1]
    tm = min(tm, n)
    tk = min(tk, n)
    assert n % tm == 0 and n % tk == 0, "pad node count to a multiple of the tile size"
    grid = (n // tm, n // tk)

    a_isz = a_norm.dtype.itemsize
    h_isz = h.dtype.itemsize
    o_isz = jnp.dtype(out_dtype).itemsize

    # VMEM accounting (double-buffered inputs/outputs, f32 accumulator, resident weights).
    w_bytes = 2 * (w_self.size * w_self.dtype.itemsize
                   + w_neigh.size * w_neigh.dtype.itemsize
                   + bias.size * bias.dtype.itemsize)
    base_bytes = (2 * tm * tk * a_isz          # A tiles
                  + 2 * tm * hp * o_isz        # out tiles
                  + tm * f * 4                 # accumulator
                  + w_bytes)
    resident_h_bytes = 2 * n * f * h_isz       # constant index map still allocates 2 buffers
    streamed_h_bytes = 2 * tk * f * h_isz + 2 * tm * f * h_isz

    vmem_cap = _vmem_capacity_bytes()
    budget = int(vmem_cap * 0.75)              # ~48 MiB on v7x, ~96 MiB on v5e/v6e
    use_resident = (not force_streamed) and (base_bytes + resident_h_bytes <= budget)

    needed = base_bytes + (resident_h_bytes if use_resident else streamed_h_bytes)
    vmem_limit = int(min(budget, max(needed + (16 << 20), 32 << 20)))

    if use_resident:
        in_specs = [
            pl.BlockSpec((tm, tk), lambda i, k: (i, k)),   # A_norm tile (dst, src)
            pl.BlockSpec((n, f), lambda i, k: (0, 0)),     # H fully resident (DMA'd once)
            pl.BlockSpec((f, hp), lambda i, k: (0, 0)),    # W_self
            pl.BlockSpec((f, hp), lambda i, k: (0, 0)),    # W_neigh
            pl.BlockSpec((1, hp), lambda i, k: (0, 0)),    # bias (f32)
        ]
        kernel = functools.partial(_sage_layer_kernel_resident,
                                   apply_relu=apply_relu, tm=tm, tk=tk)
        args = (a_norm, h, w_self, w_neigh, bias)
        h_traffic = n * f * h_isz
    else:
        in_specs = [
            pl.BlockSpec((tm, tk), lambda i, k: (i, k)),   # A_norm tile (dst, src)
            pl.BlockSpec((tk, f), lambda i, k: (k, 0)),    # H rows of the src tile
            pl.BlockSpec((tm, f), lambda i, k: (i, 0)),    # H rows of the dst tile (self path)
            pl.BlockSpec((f, hp), lambda i, k: (0, 0)),    # W_self
            pl.BlockSpec((f, hp), lambda i, k: (0, 0)),    # W_neigh
            pl.BlockSpec((1, hp), lambda i, k: (0, 0)),    # bias (f32)
        ]
        kernel = functools.partial(_sage_layer_kernel_streamed, apply_relu=apply_relu)
        args = (a_norm, h, h, w_self, w_neigh, bias)
        h_traffic = (grid[0] + 1) * n * f * h_isz

    flops = 2 * n * n * f + 2 * (2 * n * f * hp)
    bytes_accessed = (n * n * a_isz + h_traffic
                      + w_self.size * w_self.dtype.itemsize
                      + w_neigh.size * w_neigh.dtype.itemsize
                      + bias.size * bias.dtype.itemsize
                      + n * hp * o_isz)

    return pl.pallas_call(
        kernel,
        out_shape=jax.ShapeDtypeStruct((n, hp), out_dtype),
        grid_spec=pltpu.PrefetchScalarGridSpec(
            num_scalar_prefetch=0,
            grid=grid,
            in_specs=in_specs,
            out_specs=pl.BlockSpec((tm, hp), lambda i, k: (i, 0)),
            scratch_shapes=[pltpu.VMEM((tm, f), jnp.float32)],  # f32 aggregation accumulator
        ),
        compiler_params=pltpu.CompilerParams(
            dimension_semantics=("parallel", "arbitrary"),
            vmem_limit_bytes=vmem_limit,
        ),
        cost_estimate=pl.CostEstimate(flops=int(flops), transcendentals=0,
                                      bytes_accessed=int(bytes_accessed)),
    )(*args)


def graphsage_forward(a_norm, x, params, h_feats, *, tm=512, tk=256, force_streamed=False):
    a_bf = a_norm.astype(jnp.bfloat16)
    h = sage_layer(a_bf, x.astype(jnp.bfloat16),
                   params["w1_self"], params["w1_neigh"], params["b1"],
                   apply_relu=True, out_dtype=jnp.bfloat16,
                   tm=tm, tk=tk, force_streamed=force_streamed)
    h = sage_layer(a_bf, h,
                   params["w2_self"], params["w2_neigh"], params["b2"],
                   apply_relu=False, out_dtype=jnp.bfloat16,   # lane-dense bf16 writeback
                   tm=tm, tk=tk, force_streamed=force_streamed)
    return h[:, :h_feats].astype(jnp.float32)


# --------------------------------------------------------------------------------------------
# Demo / self-check
# --------------------------------------------------------------------------------------------
if __name__ == "__main__":
    key = jax.random.PRNGKey(0)
    N, IN_FEATS, H_FEATS, NUM_EDGES = 256, 8, 32, 1024
    HP = 128   # hidden width padded to one full lane (lane-dense stores, full MXU columns)

    (k_src, k_dst, k_w, k_x, k1, k2, k3, k4, kb1, kb2) = jax.random.split(key, 10)

    # Random graph (edge list) + per-edge weights. weights[g.edata[dgl.EID]] is a gather by
    # edge id; with edge ids 0..E-1 it is the identity.
    src = jax.random.randint(k_src, (NUM_EDGES,), 0, N)
    dst = jax.random.randint(k_dst, (NUM_EDGES,), 0, N)
    edge_w = jax.random.uniform(k_w, (NUM_EDGES,), dtype=jnp.float32)

    # Glue: densify the graph and fold the 'mean' aggregator's 1/in_degree into the adjacency.
    a = jnp.zeros((N, N), jnp.float32).at[dst, src].add(edge_w)
    deg = jnp.zeros((N,), jnp.float32).at[dst].add(1.0)
    a_norm = a / jnp.maximum(deg, 1.0)[:, None]     # isolated nodes -> zero row -> agg = 0

    x = jax.random.normal(k_x, (N, IN_FEATS), dtype=jnp.float32)

    def pad_to(w, rows, cols):
        return jnp.zeros((rows, cols), w.dtype).at[: w.shape[0], : w.shape[1]].set(w)

    # SAGEConv(in, out) parameters (fc_self, fc_neigh, bias), zero-padded to HP lanes.
    params = {
        "w1_self":  pad_to(0.1 * jax.random.normal(k1, (IN_FEATS, H_FEATS), dtype=jnp.float32),
                           IN_FEATS, HP).astype(jnp.bfloat16),
        "w1_neigh": pad_to(0.1 * jax.random.normal(k2, (IN_FEATS, H_FEATS), dtype=jnp.float32),
                           IN_FEATS, HP).astype(jnp.bfloat16),
        "b1":       pad_to(0.1 * jax.random.normal(kb1, (1, H_FEATS), dtype=jnp.float32), 1, HP),
        "w2_self":  pad_to(0.1 * jax.random.normal(k3, (H_FEATS, H_FEATS), dtype=jnp.float32),
                           HP, HP).astype(jnp.bfloat16),
        "w2_neigh": pad_to(0.1 * jax.random.normal(k4, (H_FEATS, H_FEATS), dtype=jnp.float32),
                           HP, HP).astype(jnp.bfloat16),
        "b2":       pad_to(0.1 * jax.random.normal(kb2, (1, H_FEATS), dtype=jnp.float32), 1, HP),
    }

    # Primary path: VMEM-resident H, single (1,1) tile at this tiny size.
    out = jax.block_until_ready(graphsage_forward(a_norm, x, params, H_FEATS))

    # Also exercise the streamed-H fallback with a real (2,2) grid + accumulator pipeline.
    out_streamed = jax.block_until_ready(
        graphsage_forward(a_norm, x, params, H_FEATS, tm=128, tk=128, force_streamed=True))

    # Pure-JAX reference of the same (bf16-input, f32-accumulate) math.
    a32 = a_norm.astype(jnp.bfloat16).astype(jnp.float32)
    x32 = x.astype(jnp.bfloat16).astype(jnp.float32)

    def ref_layer(h, ws, wn, b, relu):
        agg = a32 @ h
        o = h @ ws.astype(jnp.float32) + agg @ wn.astype(jnp.float32) + b
        return jnp.maximum(o, 0.0) if relu else o

    h1 = ref_layer(x32, params["w1_self"], params["w1_neigh"], params["b1"], True)
    h1 = h1.astype(jnp.bfloat16).astype(jnp.float32)   # layer-1 output is materialized as bf16
    ref = ref_layer(h1, params["w2_self"], params["w2_neigh"], params["b2"], False)[:, :H_FEATS]

    assert out.shape == (N, H_FEATS)
    assert jnp.allclose(out, ref, atol=3e-2, rtol=3e-2), float(jnp.max(jnp.abs(out - ref)))
    assert jnp.allclose(out_streamed, ref, atol=3e-2, rtol=3e-2), \
        float(jnp.max(jnp.abs(out_streamed - ref)))

    print("KERNEL_OK")
</pallas_src>

<mosaic_0001>
module attributes {stable_mosaic.version = 11 : i64} {
  func.func @_sage_layer_kernel_resident(%arg0: i32, %arg1: i32, %arg2: memref<256x256xbf16, #tpu.memory_space<vmem>>, %arg3: memref<256x8xbf16, #tpu.memory_space<vmem>>, %arg4: memref<8x128xbf16, #tpu.memory_space<vmem>>, %arg5: memref<8x128xbf16, #tpu.memory_space<vmem>>, %arg6: memref<1x128xf32, #tpu.memory_space<vmem>>, %arg7: memref<256x128xbf16, #tpu.memory_space<vmem>>, %arg8: memref<256x8xf32, #tpu.memory_space<vmem>>) attributes {dimension_semantics = [#tpu.dimension_semantics<parallel>, #tpu.dimension_semantics<arbitrary>], iteration_bounds = array<i64: 1, 1>, scalar_prefetch = 0 : i64, scratch_operands = 1 : i64, tpu.core_type = #tpu.core_type<tc>, window_params = [{transform_indices = @transform_0, window_bounds = array<i64: 256, 256>}, {pipeline_mode = #tpu.pipeline_mode<synchronous>, transform_indices = @transform_1, window_bounds = array<i64: 256, 8>}, {pipeline_mode = #tpu.pipeline_mode<synchronous>, transform_indices = @transform_2, window_bounds = array<i64: 8, 128>}, {pipeline_mode = #tpu.pipeline_mode<synchronous>, transform_indices = @transform_3, window_bounds = array<i64: 8, 128>}, {pipeline_mode = #tpu.pipeline_mode<synchronous>, transform_indices = @transform_4, window_bounds = array<i64: 1, 128>}, {transform_indices = @transform_5, window_bounds = array<i64: 256, 128>}]} {
    %c0_i32 = arith.constant 0 : i32
    %0 = arith.cmpi eq, %arg1, %c0_i32 : i32
    %1 = arith.extui %0 : i1 to i32
    %c0_i32_0 = arith.constant 0 : i32
    %2 = arith.cmpi ne, %1, %c0_i32_0 : i32
    scf.if %2 {
      %cst_9 = arith.constant 0.000000e+00 : f32
      %15 = vector.broadcast %cst_9 : f32 to vector<256x8xf32>
      %c0_10 = arith.constant 0 : index
      %c0_11 = arith.constant 0 : index
      %16 = vector.load %arg8[%c0_10, %c0_11] : memref<256x8xf32, #tpu.memory_space<vmem>>, vector<256x8xf32>
      tpu.vector_store %arg8[%c0_10, %c0_11], %15 {strides = array<i32>} : memref<256x8xf32, #tpu.memory_space<vmem>>, vector<256x8xf32>,
    } else {
    }
    %c256_i32 = arith.constant 256 : i32
    %3 = arith.muli %arg1, %c256_i32 : i32
    %4 = tpu.assume_multiple %3, 256 : i32
    %c0 = arith.constant 0 : index
    %c0_1 = arith.constant 0 : index
    %5 = vector.load %arg8[%c0, %c0_1] : memref<256x8xf32, #tpu.memory_space<vmem>>, vector<256x8xf32>
    %c0_2 = arith.constant 0 : index
    %c0_3 = arith.constant 0 : index
    %6 = vector.load %arg2[%c0_2, %c0_3] : memref<256x256xbf16, #tpu.memory_space<vmem>>, vector<256x256xbf16>
    %7 = arith.index_cast %4 : i32 to index
    %c0_4 = arith.constant 0 : index
    %8 = vector.load %arg3[%7, %c0_4] : memref<256x8xbf16, #tpu.memory_space<vmem>>, vector<256x8xbf16>
    %cst = arith.constant dense<0.000000e+00> : vector<256x8xf32>
    %9 = tpu.matmul %6, %8, %cst {dimension_numbers = #tpu.dot_dimension_numbers<[1], [0], [0], [1], [0, 0, 1, 1], [], []>} : vector<256x256xbf16>, vector<256x8xbf16>, vector<256x8xf32> -> vector<256x8xf32>
    %10 = arith.addf %5, %9 : vector<256x8xf32>
    %c0_5 = arith.constant 0 : index
    %c0_6 = arith.constant 0 : index
    %11 = vector.load %arg8[%c0_5, %c0_6] : memref<256x8xf32, #tpu.memory_space<vmem>>, vector<256x8xf32>
    tpu.vector_store %arg8[%c0_5, %c0_6], %10 {strides = array<i32>} : memref<256x8xf32, #tpu.memory_space<vmem>>, vector<256x8xf32>,
    %c0_i32_7 = arith.constant 0 : i32
    %12 = arith.cmpi eq, %arg1, %c0_i32_7 : i32
    %13 = arith.extui %12 : i1 to i32
    %c0_i32_8 = arith.constant 0 : i32
    %14 = arith.cmpi ne, %13, %c0_i32_8 : i32
    scf.if %14 {
      %c256_i32_9 = arith.constant 256 : i32
      %15 = arith.muli %arg0, %c256_i32_9 : i32
      %16 = tpu.assume_multiple %15, 256 : i32
      %17 = arith.index_cast %16 : i32 to index
      %c0_10 = arith.constant 0 : index
      %18 = vector.load %arg3[%17, %c0_10] : memref<256x8xbf16, #tpu.memory_space<vmem>>, vector<256x8xbf16>
      %c0_11 = arith.constant 0 : index
      %c0_12 = arith.constant 0 : index
      %19 = vector.load %arg4[%c0_11, %c0_12] : memref<8x128xbf16, #tpu.memory_space<vmem>>, vector<8x128xbf16>
      %cst_13 = arith.constant dense<0.000000e+00> : vector<256x128xf32>
      %20 = tpu.matmul %18, %19, %cst_13 {dimension_numbers = #tpu.dot_dimension_numbers<[1], [0], [0], [1], [0, 0, 1, 1], [], []>} : vector<256x8xbf16>, vector<8x128xbf16>, vector<256x128xf32> -> vector<256x128xf32>
      %c0_14 = arith.constant 0 : index
      %c0_15 = arith.constant 0 : index
      %21 = vector.load %arg8[%c0_14, %c0_15] : memref<256x8xf32, #tpu.memory_space<vmem>>, vector<256x8xf32>
      %c0_16 = arith.constant 0 : index
      %c0_17 = arith.constant 0 : index
      %22 = vector.load %arg5[%c0_16, %c0_17] : memref<8x128xbf16, #tpu.memory_space<vmem>>, vector<8x128xbf16>
      %23 = arith.extf %22 : vector<8x128xbf16> to vector<8x128xf32>
      %cst_18 = arith.constant dense<0.000000e+00> : vector<256x128xf32>
      %24 = tpu.matmul %21, %23, %cst_18 {dimension_numbers = #tpu.dot_dimension_numbers<[1], [0], [0], [1], [0, 0, 1, 1], [], []>} : vector<256x8xf32>, vector<8x128xf32>, vector<256x128xf32> -> vector<256x128xf32>
      %25 = arith.addf %20, %24 : vector<256x128xf32>
      %c0_19 = arith.constant 0 : index
      %c0_20 = arith.constant 0 : index
      %26 = vector.load %arg6[%c0_19, %c0_20] : memref<1x128xf32, #tpu.memory_space<vmem>>, vector<1x128xf32>
      %27 = vector.broadcast %26 : vector<1x128xf32> to vector<256x128xf32>
      %28 = arith.addf %25, %27 : vector<256x128xf32>
      %cst_21 = arith.constant 0.000000e+00 : f32
      %29 = vector.broadcast %cst_21 : f32 to vector<256x128xf32>
      %30 = arith.maximumf %28, %29 : vector<256x128xf32>
      %31 = arith.truncf %30 : vector<256x128xf32> to vector<256x128xbf16>
      %c0_22 = arith.constant 0 : index
      %c0_23 = arith.constant 0 : index
      %32 = vector.load %arg7[%c0_22, %c0_23] : memref<256x128xbf16, #tpu.memory_space<vmem>>, vector<256x128xbf16>
      tpu.vector_store %arg7[%c0_22, %c0_23], %31 {strides = array<i32>} : memref<256x128xbf16, #tpu.memory_space<vmem>>, vector<256x128xbf16>,
    } else {
    }
    return
  }
  func.func @transform_0(%arg0: i32, %arg1: i32) -> (i32, i32) {
    %c0_i32 = arith.constant 0 : i32
    return %arg0, %arg1 : i32, i32
  }
  func.func @transform_1(%arg0: i32, %arg1: i32) -> (i32, i32) {
    %c0_i32 = arith.constant 0 : i32
    %c0_i32_0 = arith.constant 0 : i32
    %c0_i32_1 = arith.constant 0 : i32
    return %c0_i32, %c0_i32_0 : i32, i32
  }
  func.func @transform_2(%arg0: i32, %arg1: i32) -> (i32, i32) {
    %c0_i32 = arith.constant 0 : i32
    %c0_i32_0 = arith.constant 0 : i32
    %c0_i32_1 = arith.constant 0 : i32
    return %c0_i32, %c0_i32_0 : i32, i32
  }
  func.func @transform_3(%arg0: i32, %arg1: i32) -> (i32, i32) {
    %c0_i32 = arith.constant 0 : i32
    %c0_i32_0 = arith.constant 0 : i32
    %c0_i32_1 = arith.constant 0 : i32
    return %c0_i32, %c0_i32_0 : i32, i32
  }
  func.func @transform_4(%arg0: i32, %arg1: i32) -> (i32, i32) {
    %c0_i32 = arith.constant 0 : i32
    %c0_i32_0 = arith.constant 0 : i32
    %c0_i32_1 = arith.constant 0 : i32
    return %c0_i32, %c0_i32_0 : i32, i32
  }
  func.func @transform_5(%arg0: i32, %arg1: i32) -> (i32, i32) {
    %c0_i32 = arith.constant 0 : i32
    %c0_i32_0 = arith.constant 0 : i32
    return %arg0, %c0_i32 : i32, i32
  }
}

</mosaic_0001>

<bundles_post_ra>
// kernel: tpu_custom_call.1
= control target key start
LH: loop header
LB: loop body
LE: loop exit
PB: predicated region body
PF: predicated region fallthrough
CT: control target
= control target key end

     0   :  { %10 = vsyncpa [#allocation4], 0  ;;  %s2634_s0 = inlined_call_operand.hbm [shape: bf16[256,256], index: 0, kind: input, shape index: {}]   ;;  %s2635_s1 = inlined_call_operand.vmem [shape: bf16[256,8], index: 1, kind: input, shape index: {}]   ;;  %s2636_s2 = inlined_call_operand.vmem [shape: bf16[8,128], index: 2, kind: input, shape index: {}]   ;;  %s2637_s3 = inlined_call_operand.vmem [shape: bf16[8,128], index: 3, kind: input, shape index: {}]   ;;  %s2638_s4 = inlined_call_operand.vmem [shape: f32[1,128], index: 4, kind: input, shape index: {}]   ;;  %s2639_s5 = inlined_call_operand.hbm [shape: bf16[256,128], index: 5, kind: output, shape index: {}]  }
   0x1   :  { %11 = vsyncpa [#allocation5], 0  ;;  %s2251_s18 = smov [#allocation3]   ;;  %s2203_s22 = scalar_lea.hbm %s2634_s0, 4096 }
   0x2   :  { %s17_s19 = sshll.u32 %s2251_s18, 4  ;;  %p2204_p0 = scmp.ne.s32.totalorder %s2634_s0, %s2203_s22  ;;  %s18_s19 = int_to_ptr.vmem [resolvable:$true] %s17_s19 }
   0x3   :  { %p2207_p1 = scmp.lt.u32.totalorder %s2203_s22, %s2634_s0 }
   0x5   :  { %p2209_p2 = pnand %p2207_p1, %p2204_p0 }
   0x7   :  { %2212 = shalt.err (!%p2209_p2)
}
   0x8   :  { %s2213_s27 = scalar_lea.vmem %s18_s19, 4096  ;;  %p2218_p4 = scmp.lt.s32.totalorder %s18_s19, %s18_s19 }
   0x9   :  { %p2214_p3 = scmp.ne.s32.totalorder %s18_s19, %s2213_s27  ;;  %p2219_p5 = scmp.lt.s32.totalorder %s2213_s27, %s2213_s27 }
   0xb   :  { %p2220_p6 = por %p2219_p5, %p2218_p4 }
   0xd   :  { %p2221_p7 = pnand %p2220_p6, %p2214_p3 }
   0xf   :  { %2224 = shalt.err (!%p2221_p7)
}
  0x10   :  { %s2252_s28 = smov 128   ;;  %s2253_s29 = smov 8  }
  0x11   :  { %23 = dma.hbm_to_vmem [thread:$0]  %s2634_s0, 4096, %s18_s19, [#allocation4], %s2252_s28, %s2252_s28, %s2253_s29  }
  0x12   :  { %2247 = dma.done.wait [#allocation4], 4096  }
  0x13   :  { %2248 = vsyncadd [#allocation4], 4294963200  ;;  %v2123_v0 = vld [vmem:[%s2635_s1 + $0x40] sm:$0xff]   ;;  %v2125_v2 = vld [vmem:[%s2635_s1 + $0x48] sm:$0xff]   ;;  %vm40_vm0 = vcmask 64512   ;;  %v2254_v39 = vmov 0.0  }
  0x14   :  { %v2124_v1 = vld [vmem:[%s2635_s1] sm:$0xff]   ;;  %1869 = vmatprep.subr.bf16.mxu0 %v2123_v0  ;;  %v2126_v3 = vld [vmem:[%s2635_s1 + $0x8] sm:$0xff]   ;;  %v2127_v4 = vld [vmem:[%s2635_s1 + $0x50] sm:$0xff]   ;;  %41 = vst.msk [vmem:[#allocation2] sm:$0xff] %vm40_vm0, %v2254_v39  ;;  %vm1180_vm1 = vcmask 1043456  }
  0x15   :  { %1870 = vmatpush3.bf16.msra.mxu0 %v2124_v1  ;;  %v2128_v5 = vld [vmem:[%s2635_s1 + $0x10] sm:$0xff]   ;;  %v2129_v6 = vld [vmem:[%s2635_s1 + $0x58] sm:$0xff]   ;;  %v2131_v8 = vld [vmem:[%s2635_s1 + $0x60] sm:$0xff]   ;;  %42 = vst.msk [vmem:[#allocation2 + $0x8] sm:$0xff] %vm40_vm0, %v2254_v39 }
  0x16   :  { %1871 = vmatprep.subr.bf16.mxu0 %v2125_v2  ;;  %v2130_v7 = vld [vmem:[%s2635_s1 + $0x18] sm:$0xff]   ;;  %v2132_v9 = vld [vmem:[%s2635_s1 + $0x20] sm:$0xff]   ;;  %v2133_v10 = vld [vmem:[%s2635_s1 + $0x68] sm:$0xff]   ;;  %43 = vst.msk [vmem:[#allocation2 + $0x10] sm:$0xff] %vm40_vm0, %v2254_v39 }
  0x17   :  { %v2141_v11 = vld [vmem:[#allocation3 + $0x4] ss:$8 sps:$4 sm:$0xff]   ;;  %v2135_v13 = vld [vmem:[%s2635_s1 + $0x70] sm:$0xff]   ;;  %v2137_v15 = vld [vmem:[%s2635_s1 + $0x78] sm:$0xff]   ;;  %44 = vst.msk [vmem:[#allocation2 + $0x18] sm:$0xff] %vm40_vm0, %v2254_v39 }
  0x18   :  { %v2134_v12 = vld [vmem:[%s2635_s1 + $0x28] sm:$0xff]   ;;  %462 = vmatprep.mubr.bf16.mxu0 %v2141_v11  ;;  %v2136_v14 = vld [vmem:[%s2635_s1 + $0x30] sm:$0xff]   ;;  %v2138_v16 = vld [vmem:[%s2635_s1 + $0x38] sm:$0xff]   ;;  %45 = vst.msk [vmem:[#allocation2 + $0x20] sm:$0xff] %vm40_vm0, %v2254_v39 }
  0x19   :  { %1872 = vmatpush3.bf16.msra.mxu0 %v2126_v3  ;;  %v2139_v17 = vld [vmem:[#allocation3] ss:$8 sps:$4 sm:$0xff]   ;;  %v2142_v18 = vld [vmem:[#allocation3 + $0x14] ss:$8 sps:$4 sm:$0xff]   ;;  %v2144_v19 = vld [vmem:[#allocation3 + $0x10] ss:$8 sps:$4 sm:$0xff]  }
  0x1a   :  { %1873 = vmatprep.subr.bf16.mxu0 %v2127_v4  ;;  %v2145_v20 = vld [vmem:[#allocation3 + $0x24] ss:$8 sps:$4 sm:$0xff]   ;;  %v2147_v21 = vld [vmem:[#allocation3 + $0x20] ss:$8 sps:$4 sm:$0xff]   ;;  %v2148_v22 = vld [vmem:[#allocation3 + $0x34] ss:$8 sps:$4 sm:$0xff]  }
  0x1b   :  { %v2150_v23 = vld [vmem:[#allocation3 + $0x30] ss:$8 sps:$4 sm:$0xff]   ;;  %v2151_v24 = vld [vmem:[#allocation3 + $0x44] ss:$8 sps:$4 sm:$0xff]   ;;  %v2153_v25 = vld [vmem:[#allocation3 + $0x40] ss:$8 sps:$4 sm:$0xff]  }
  0x1c   :  { %v2154_v26 = vld [vmem:[#allocation3 + $0x54] ss:$8 sps:$4 sm:$0xff]   ;;  %v2156_v27 = vld [vmem:[#allocation3 + $0x50] ss:$8 sps:$4 sm:$0xff]   ;;  %v2157_v28 = vld [vmem:[#allocation3 + $0x64] ss:$8 sps:$4 sm:$0xff]  }
  0x1d   :  { %1874 = vmatpush3.bf16.msra.mxu0 %v2128_v5  ;;  %v2159_v29 = vld [vmem:[#allocation3 + $0x60] ss:$8 sps:$4 sm:$0xff]   ;;  %v2160_v30 = vld [vmem:[#allocation3 + $0x74] ss:$8 sps:$4 sm:$0xff]   ;;  %v2162_v31 = vld [vmem:[#allocation3 + $0x70] ss:$8 sps:$4 sm:$0xff]  }
  0x1e   :  { %1875 = vmatprep.subr.bf16.mxu0 %v2129_v6  ;;  %v2163_v32 = vld [vmem:[#allocation3 + $0x84] ss:$8 sps:$4 sm:$0xff]   ;;  %v2165_v33 = vld [vmem:[#allocation3 + $0x80] ss:$8 sps:$4 sm:$0xff]   ;;  %v2166_v34 = vld [vmem:[#allocation3 + $0x94] ss:$8 sps:$4 sm:$0xff]  }
  0x1f   :  { %v2168_v35 = vld [vmem:[#allocation3 + $0x90] ss:$8 sps:$4 sm:$0xff]   ;;  %v2169_v36 = vld [vmem:[#allocation3 + $0xa4] ss:$8 sps:$4 sm:$0xff]   ;;  %v2171_v37 = vld [vmem:[#allocation3 + $0xa0] ss:$8 sps:$4 sm:$0xff]  }
  0x20   :  { %v2172_v38 = vld [vmem:[#allocation3 + $0xb4] ss:$8 sps:$4 sm:$0xff]   ;;  %46 = vst.msk [vmem:[#allocation2 + $0x28] sm:$0xff] %vm40_vm0, %v2254_v39  ;;  %47 = vst.msk [vmem:[#allocation2 + $0x30] sm:$0xff] %vm40_vm0, %v2254_v39  ;;  %v2174_v40 = vld [vmem:[#allocation3 + $0xb0] ss:$8 sps:$4 sm:$0xff]  }
  0x21   :  { %1876 = vmatpush3.bf16.msra.mxu0 %v2130_v7  ;;  %48 = vst.msk [vmem:[#allocation2 + $0x38] sm:$0xff] %vm40_vm0, %v2254_v39  ;;  %49 = vst.msk [vmem:[#allocation2 + $0x40] sm:$0xff] %vm40_vm0, %v2254_v39  ;;  %v2175_v41 = vld [vmem:[#allocation3 + $0xc4] ss:$8 sps:$4 sm:$0xff]   ;;  %v2177_v42 = vld [vmem:[#allocation3 + $0xc0] ss:$8 sps:$4 sm:$0xff]  }
  0x22   :  { %1877 = vmatprep.subr.bf16.mxu0 %v2131_v8  ;;  %50 = vst.msk [vmem:[#allocation2 + $0x48] sm:$0xff] %vm40_vm0, %v2254_v39  ;;  %51 = vst.msk [vmem:[#allocation2 + $0x50] sm:$0xff] %vm40_vm0, %v2254_v39  ;;  %v2178_v43 = vld [vmem:[#allocation3 + $0xd4] ss:$8 sps:$4 sm:$0xff]   ;;  %v729_v44 = vld [vmem:[%s2637_s3] sm:$0xf] }
  0x23   :  { %52 = vst.msk [vmem:[#allocation2 + $0x58] sm:$0xff] %vm40_vm0, %v2254_v39  ;;  %53 = vst.msk [vmem:[#allocation2 + $0x60] sm:$0xff] %vm40_vm0, %v2254_v39  ;;  %v730_v45 = vunpack.c.l.bf16 %v729_v44  ;;  %v2180_v46 = vld [vmem:[#allocation3 + $0xd0] ss:$8 sps:$4 sm:$0xff]   ;;  %v2181_v47 = vld [vmem:[#allocation3 + $0xe4] ss:$8 sps:$4 sm:$0xff]  }
  0x24   :  { %54 = vst.msk [vmem:[#allocation2 + $0x68] sm:$0xff] %vm40_vm0, %v2254_v39  ;;  %55 = vst.msk [vmem:[#allocation2 + $0x70] sm:$0xff] %vm40_vm0, %v2254_v39  ;;  %v2183_v48 = vld [vmem:[#allocation3 + $0xe0] ss:$8 sps:$4 sm:$0xff]   ;;  %v2184_v49 = vld [vmem:[#allocation3 + $0xf4] ss:$8 sps:$4 sm:$0xff]  }
  0x25   :  { %1878 = vmatpush3.bf16.msra.mxu0 %v2132_v9  ;;  %56 = vst.msk [vmem:[#allocation2 + $0x78] sm:$0xff] %vm40_vm0, %v2254_v39  ;;  %57 = vst.msk [vmem:[#allocation2 + $0x80] sm:$0xff] %vm40_vm0, %v2254_v39  ;;  %2031 = vmatprep.subr.mxu1 %v730_v45  ;;  %v2186_v50 = vld [vmem:[#allocation3 + $0xf0] ss:$8 sps:$4 sm:$0xff]   ;;  %v696_v51 = vld [vmem:[%s2636_s2] sm:$0xf] }
  0x26   :  { %1879 = vmatprep.subr.bf16.mxu0 %v2133_v10  ;;  %58 = vst.msk [vmem:[#allocation2 + $0x88] sm:$0xff] %vm40_vm0, %v2254_v39  ;;  %59 = vst.msk [vmem:[#allocation2 + $0x90] sm:$0xff] %vm40_vm0, %v2254_v39  ;;  %2032 = vmatpush3.msra.mxu1 %v730_v45  ;;  %v74_v53 = vld [vmem:[#allocation2] sm:$0xff]  ;;  %v75_v57 = vld [vmem:[#allocation2 + $0x8] sm:$0xff]  ;;  %v1182_v9 = vsel %vm1180_vm1, %v696_v51, 0 }
  0x27   :  { %60 = vst.msk [vmem:[#allocation2 + $0x98] sm:$0xff] %vm40_vm0, %v2254_v39  ;;  %61 = vst.msk [vmem:[#allocation2 + $0xa0] sm:$0xff] %vm40_vm0, %v2254_v39  ;;  %2115 = vmatprep.subr.msk.bf16.mxu1 %vm1180_vm1, %v696_v51  ;;  %v76_v63 = vld [vmem:[#allocation2 + $0x10] sm:$0xff]  ;;  %v77_v3 = vld [vmem:[#allocation2 + $0x18] sm:$0xff] }
  0x28   :  { %62 = vst.msk [vmem:[#allocation2 + $0xa8] sm:$0xff] %vm40_vm0, %v2254_v39  ;;  %63 = vst.msk [vmem:[#allocation2 + $0xb0] sm:$0xff] %vm40_vm0, %v2254_v39 }
  0x29   :  { %1880 = vmatpush3.bf16.msra.mxu0 %v2134_v12  ;;  %64 = vst.msk [vmem:[#allocation2 + $0xb8] sm:$0xff] %vm40_vm0, %v2254_v39  ;;  %65 = vst.msk [vmem:[#allocation2 + $0xc0] sm:$0xff] %vm40_vm0, %v2254_v39  ;;  %v78_v12 = vld [vmem:[#allocation2 + $0x20] sm:$0xff] }
  0x2a   :  { %1881 = vmatprep.subr.bf16.mxu0 %v2135_v13  ;;  %66 = vst.msk [vmem:[#allocation2 + $0xc8] sm:$0xff] %vm40_vm0, %v2254_v39  ;;  %67 = vst.msk [vmem:[#allocation2 + $0xd0] sm:$0xff] %vm40_vm0, %v2254_v39 }
  0x2b   :  { %68 = vst.msk [vmem:[#allocation2 + $0xd8] sm:$0xff] %vm40_vm0, %v2254_v39  ;;  %69 = vst.msk [vmem:[#allocation2 + $0xe0] sm:$0xff] %vm40_vm0, %v2254_v39 }
  0x2c   :  { %70 = vst.msk [vmem:[#allocation2 + $0xe8] sm:$0xff] %vm40_vm0, %v2254_v39  ;;  %71 = vst.msk [vmem:[#allocation2 + $0xf0] sm:$0xff] %vm40_vm0, %v2254_v39 }
  0x2d   :  { %1882 = vmatpush3.bf16.msra.mxu0 %v2136_v14  ;;  %72 = vst.msk [vmem:[#allocation2 + $0xf8] sm:$0xff] %vm40_vm0, %v2254_v39 }
  0x2e   :  { %1883 = vmatprep.subr.bf16.mxu0 %v2137_v15 }
  0x31   :  { %1884 = vmatpush3.bf16.msra.mxu0 %v2138_v16  ;;  %v79_v16 = vld [vmem:[#allocation2 + $0x28] sm:$0xff] }
  0x34   :  { %463 = vmatmul.mubr.bf16.vlgmr.msra.gmra.mrb[0].mxu0 %v2139_v17 }
  0x35   :  { %470 = vmatprep.mubr.bf16.mxu0 %v2142_v18 }
  0x3c   :  { %471 = vmatmul.mubr.bf16.gmra.mrb[4].mxu0 %v2144_v19 }
  0x3d   :  { %478 = vmatprep.mubr.bf16.mxu0 %v2145_v20 }
  0x44   :  { %479 = vmatmul.mubr.bf16.gmra.mrb[8].mxu0 %v2147_v21 }
  0x45   :  { %486 = vmatprep.mubr.bf16.mxu0 %v2148_v22 }
  0x4c   :  { %487 = vmatmul.mubr.bf16.gmra.mrb[12].mxu0 %v2150_v23 }
  0x4d   :  { %494 = vmatprep.mubr.bf16.mxu0 %v2151_v24  ;;  %v80_v24 = vld [vmem:[#allocation2 + $0x30] sm:$0xff] }
  0x54   :  { %495 = vmatmul.mubr.bf16.gmra.mrb[16].mxu0 %v2153_v25 }
  0x55   :  { %502 = vmatprep.mubr.bf16.mxu0 %v2154_v26 }
  0x5c   :  { %503 = vmatmul.mubr.bf16.gmra.mrb[20].mxu0 %v2156_v27 }
  0x5d   :  { %510 = vmatprep.mubr.bf16.mxu0 %v2157_v28  ;;  %v81_v28 = vld [vmem:[#allocation2 + $0x38] sm:$0xff] }
  0x64   :  { %511 = vmatmul.mubr.bf16.gmra.mrb[24].mxu0 %v2159_v29 }
  0x65   :  { %518 = vmatprep.mubr.bf16.mxu0 %v2160_v30 }
  0x6c   :  { %519 = vmatmul.mubr.bf16.gmra.mrb[28].mxu0 %v2162_v31 }
  0x6d   :  { %526 = vmatprep.mubr.bf16.mxu0 %v2163_v32 }
  0x74   :  { %527 = vmatmul.mubr.bf16.gmra.mrb[32].mxu0 %v2165_v33 }
  0x75   :  { %534 = vmatprep.mubr.bf16.mxu0 %v2166_v34 }
  0x7c   :  { %535 = vmatmul.mubr.bf16.gmra.mrb[36].mxu0 %v2168_v35 }
  0x7d   :  { %542 = vmatprep.mubr.bf16.mxu0 %v2169_v36  ;;  %v82_v36 = vld [vmem:[#allocation2 + $0x40] sm:$0xff] }
  0x84   :  { %543 = vmatmul.mubr.bf16.gmra.mrb[40].mxu0 %v2171_v37 }
  0x85   :  { %550 = vmatprep.mubr.bf16.mxu0 %v2172_v38 }
  0x8c   :  { %551 = vmatmul.mubr.bf16.gmra.mrb[44].mxu0 %v2174_v40  ;;  %v83_v40 = vld [vmem:[#allocation2 + $0x48] sm:$0xff] }
  0x8d   :  { %558 = vmatprep.mubr.bf16.mxu0 %v2175_v41 }
  0x94   :  { %559 = vmatmul.mubr.bf16.gmra.mrb[48].mxu0 %v2177_v42 }
  0x95   :  { %566 = vmatprep.mubr.bf16.mxu0 %v2178_v43 }
  0x9c   :  { %567 = vmatmul.mubr.bf16.gmra.mrb[52].mxu0 %v2180_v46 }
  0x9d   :  { %574 = vmatprep.mubr.bf16.mxu0 %v2181_v47 }
  0xa4   :  { %575 = vmatmul.mubr.bf16.gmra.mrb[56].mxu0 %v2183_v48  ;;  %v84_v48 = vld [vmem:[#allocation2 + $0x50] sm:$0xff] }
  0xa5   :  { %582 = vmatprep.mubr.bf16.mxu0 %v2184_v49 }
  0xac   :  { %583 = vmatmul.mubr.bf16.gmra.mrb[60].mxu0 %v2186_v50 }
 0x107   :  { %v1885_v52 = vpop.f32.mrb[0].mxu0 }
 0x108   :  { %v1886_v54 = vpop.f32.mrb[1].mxu0 }
 0x109   :  { %v1887_v55 = vadd.f32 %v1886_v54, %v1885_v52  ;;  %v1888_v56 = vpop.f32.mrb[2].mxu0  ;;  %v85_v52 = vld [vmem:[#allocation2 + $0x58] sm:$0xff] }
 0x10a   :  { %v1889_v58 = vpop.f32.mrb[3].mxu0 }
 0x10b   :  { %v591_v59 = vadd.f32 %v1887_v55, %v74_v53  ;;  %v1890_v60 = vadd.f32 %v1889_v58, %v1888_v56 }
 0x10d   :  { %624 = vst.msk [vmem:[#allocation2] sm:$0xff] %vm40_vm0, %v591_v59  ;;  %v592_v61 = vadd.f32 %v1890_v60, %v75_v57  ;;  %v86_v60 = vld [vmem:[#allocation2 + $0x60] sm:$0xff] }
 0x10f   :  { %625 = vst.msk [vmem:[#allocation2 + $0x8] sm:$0xff] %vm40_vm0, %v592_v61  ;;  %v1891_v62 = vpop.f32.mrb[4].mxu0 }
 0x110   :  { %v1892_v0 = vpop.f32.mrb[5].mxu0 }
 0x111   :  { %v1893_v1 = vadd.f32 %v1892_v0, %v1891_v62  ;;  %v1894_v2 = vpop.f32.mrb[6].mxu0  ;;  %v87_v0 = vld [vmem:[#allocation2 + $0x68] sm:$0xff] }
 0x112   :  { %v1895_v4 = vpop.f32.mrb[7].mxu0 }
 0x113   :  { %v593_v5 = vadd.f32 %v1893_v1, %v76_v63  ;;  %v1896_v6 = vadd.f32 %v1895_v4, %v1894_v2 }
 0x114   :  { %v697_v7 = vld [vmem:[#allocation2] sm:$0xff] }
 0x115   :  { %626 = vst.msk [vmem:[#allocation2 + $0x10] sm:$0xff] %vm40_vm0, %v593_v5  ;;  %v594_v8 = vadd.f32 %v1896_v6, %v77_v3  ;;  %2033 = vmatprep.mubr.msk.f32.mxu1 %vm40_vm0, %v697_v7 }
 0x116   :  { %v698_v10 = vld [vmem:[#allocation2 + $0x8] sm:$0xff] }
 0x117   :  { %627 = vst.msk [vmem:[#allocation2 + $0x18] sm:$0xff] %vm40_vm0, %v594_v8  ;;  %v1897_v11 = vpop.f32.mrb[8].mxu0  ;;  %2034 = vmatmul.mubr.msk.f32.vlgmr.msra.gmra.mrb[0].mxu1 %vm40_vm0, %v698_v10  ;;  %v88_v8 = vld [vmem:[#allocation2 + $0x70] sm:$0xff] }
 0x118   :  { %v1898_v13 = vpop.f32.mrb[9].mxu0  ;;  %2082 = vmatpush3.bf16.msra.mxu1 %v1182_v9 }
 0x119   :  { %v1899_v14 = vadd.f32 %v1898_v13, %v1897_v11  ;;  %v1900_v15 = vpop.f32.mrb[10].mxu0 }
 0x11a   :  { %v1901_v17 = vpop.f32.mrb[11].mxu0 }
 0x11b   :  { %v595_v18 = vadd.f32 %v1899_v14, %v78_v12  ;;  %v1902_v19 = vadd.f32 %v1901_v17, %v1900_v15  ;;  %v89_v12 = vld [vmem:[#allocation2 + $0x78] sm:$0xff] }
 0x11c   :  { %v699_v20 = vld [vmem:[#allocation2 + $0x10] sm:$0xff] }
 0x11d   :  { %628 = vst.msk [vmem:[#allocation2 + $0x20] sm:$0xff] %vm40_vm0, %v595_v18  ;;  %v596_v21 = vadd.f32 %v1902_v19, %v79_v16  ;;  %2036 = vmatprep.mubr.msk.f32.mxu1 %vm40_vm0, %v699_v20  ;;  %v90_v20 = vld [vmem:[#allocation2 + $0x80] sm:$0xff] }
 0x11e   :  { %v700_v22 = vld [vmem:[#allocation2 + $0x18] sm:$0xff] }
 0x11f   :  { %629 = vst.msk [vmem:[#allocation2 + $0x28] sm:$0xff] %vm40_vm0, %v596_v21  ;;  %v1903_v23 = vpop.f32.mrb[12].mxu0  ;;  %2037 = vmatmul.mubr.msk.f32.gmra.mrb[2].mxu1 %vm40_vm0, %v700_v22 }
 0x120   :  { %v1904_v25 = vpop.f32.mrb[13].mxu0 }
 0x121   :  { %v1905_v26 = vadd.f32 %v1904_v25, %v1903_v23  ;;  %v1906_v27 = vpop.f32.mrb[14].mxu0 }
 0x122   :  { %v1907_v29 = vpop.f32.mrb[15].mxu0 }
 0x123   :  { %v597_v30 = vadd.f32 %v1905_v26, %v80_v24  ;;  %v1908_v31 = vadd.f32 %v1907_v29, %v1906_v27  ;;  %v91_v24 = vld [vmem:[#allocation2 + $0x88] sm:$0xff] }
 0x124   :  { %v701_v32 = vld [vmem:[#allocation2 + $0x20] sm:$0xff] }
 0x125   :  { %630 = vst.msk [vmem:[#allocation2 + $0x30] sm:$0xff] %vm40_vm0, %v597_v30  ;;  %v598_v33 = vadd.f32 %v1908_v31, %v81_v28  ;;  %2039 = vmatprep.mubr.msk.f32.mxu1 %vm40_vm0, %v701_v32  ;;  %v92_v32 = vld [vmem:[#allocation2 + $0x90] sm:$0xff] }
 0x126   :  { %v702_v34 = vld [vmem:[#allocation2 + $0x28] sm:$0xff] }
 0x127   :  { %631 = vst.msk [vmem:[#allocation2 + $0x38] sm:$0xff] %vm40_vm0, %v598_v33  ;;  %v1909_v35 = vpop.f32.mrb[16].mxu0  ;;  %2040 = vmatmul.mubr.msk.f32.gmra.mrb[4].mxu1 %vm40_vm0, %v702_v34 }
 0x128   :  { %v1910_v37 = vpop.f32.mrb[17].mxu0 }
 0x129   :  { %v1911_v38 = vadd.f32 %v1910_v37, %v1909_v35  ;;  %v1912_v39 = vpop.f32.mrb[18].mxu0 }
 0x12a   :  { %v1913_v41 = vpop.f32.mrb[19].mxu0 }
 0x12b   :  { %v599_v42 = vadd.f32 %v1911_v38, %v82_v36  ;;  %v1914_v43 = vadd.f32 %v1913_v41, %v1912_v39  ;;  %v93_v36 = vld [vmem:[#allocation2 + $0x98] sm:$0xff] }
 0x12c   :  { %v703_v44 = vld [vmem:[#allocation2 + $0x30] sm:$0xff] }
 0x12d   :  { %632 = vst.msk [vmem:[#allocation2 + $0x40] sm:$0xff] %vm40_vm0, %v599_v42  ;;  %v600_v45 = vadd.f32 %v1914_v43, %v83_v40  ;;  %2042 = vmatprep.mubr.msk.f32.mxu1 %vm40_vm0, %v703_v44  ;;  %v94_v44 = vld [vmem:[#allocation2 + $0xa0] sm:$0xff] }
 0x12e   :  { %v704_v46 = vld [vmem:[#allocation2 + $0x38] sm:$0xff] }
 0x12f   :  { %633 = vst.msk [vmem:[#allocation2 + $0x48] sm:$0xff] %vm40_vm0, %v600_v45  ;;  %v1915_v47 = vpop.f32.mrb[20].mxu0  ;;  %2043 = vmatmul.mubr.msk.f32.gmra.mrb[6].mxu1 %vm40_vm0, %v704_v46 }
 0x130   :  { %v1916_v49 = vpop.f32.mrb[21].mxu0 }
 0x131   :  { %v1917_v50 = vadd.f32 %v1916_v49, %v1915_v47  ;;  %v1918_v51 = vpop.f32.mrb[22].mxu0 }
 0x132   :  { %v1919_v53 = vpop.f32.mrb[23].mxu0 }
 0x133   :  { %v601_v54 = vadd.f32 %v1917_v50, %v84_v48  ;;  %v1920_v55 = vadd.f32 %v1919_v53, %v1918_v51  ;;  %v95_v48 = vld [vmem:[#allocation2 + $0xa8] sm:$0xff] }
 0x134   :  { %v705_v56 = vld [vmem:[#allocation2 + $0x40] sm:$0xff] }
 0x135   :  { %634 = vst.msk [vmem:[#allocation2 + $0x50] sm:$0xff] %vm40_vm0, %v601_v54  ;;  %v602_v57 = vadd.f32 %v1920_v55, %v85_v52  ;;  %2045 = vmatprep.mubr.msk.f32.mxu1 %vm40_vm0, %v705_v56  ;;  %v96_v56 = vld [vmem:[#allocation2 + $0xb0] sm:$0xff] }
 0x136   :  { %v706_v58 = vld [vmem:[#allocation2 + $0x48] sm:$0xff] }
 0x137   :  { %635 = vst.msk [vmem:[#allocation2 + $0x58] sm:$0xff] %vm40_vm0, %v602_v57  ;;  %v1921_v59 = vpop.f32.mrb[24].mxu0  ;;  %2046 = vmatmul.mubr.msk.f32.gmra.mrb[8].mxu1 %vm40_vm0, %v706_v58 }
 0x138   :  { %v1922_v61 = vpop.f32.mrb[25].mxu0 }
 0x139   :  { %v1923_v62 = vadd.f32 %v1922_v61, %v1921_v59  ;;  %v1924_v63 = vpop.f32.mrb[26].mxu0 }
 0x13a   :  { %v1925_v1 = vpop.f32.mrb[27].mxu0 }
 0x13b   :  { %v603_v2 = vadd.f32 %v1923_v62, %v86_v60  ;;  %v1926_v3 = vadd.f32 %v1925_v1, %v1924_v63  ;;  %v97_v60 = vld [vmem:[#allocation2 + $0xb8] sm:$0xff] }
 0x13c   :  { %v707_v4 = vld [vmem:[#allocation2 + $0x50] sm:$0xff] }
 0x13d   :  { %636 = vst.msk [vmem:[#allocation2 + $0x60] sm:$0xff] %vm40_vm0, %v603_v2  ;;  %v604_v5 = vadd.f32 %v1926_v3, %v87_v0  ;;  %2048 = vmatprep.mubr.msk.f32.mxu1 %vm40_vm0, %v707_v4  ;;  %v98_v4 = vld [vmem:[#allocation2 + $0xc0] sm:$0xff] }
 0x13e   :  { %v708_v6 = vld [vmem:[#allocation2 + $0x58] sm:$0xff] }
 0x13f   :  { %637 = vst.msk [vmem:[#allocation2 + $0x68] sm:$0xff] %vm40_vm0, %v604_v5  ;;  %v1927_v7 = vpop.f32.mrb[28].mxu0  ;;  %2049 = vmatmul.mubr.msk.f32.gmra.mrb[10].mxu1 %vm40_vm0, %v708_v6 }
 0x140   :  { %v1928_v9 = vpop.f32.mrb[29].mxu0 }
 0x141   :  { %v1929_v10 = vadd.f32 %v1928_v9, %v1927_v7  ;;  %v1930_v11 = vpop.f32.mrb[30].mxu0 }
 0x142   :  { %v1931_v13 = vpop.f32.mrb[31].mxu0 }
 0x143   :  { %v605_v14 = vadd.f32 %v1929_v10, %v88_v8  ;;  %v1932_v15 = vadd.f32 %v1931_v13, %v1930_v11  ;;  %v99_v8 = vld [vmem:[#allocation2 + $0xc8] sm:$0xff] }
 0x144   :  { %v709_v16 = vld [vmem:[#allocation2 + $0x60] sm:$0xff] }
 0x145   :  { %638 = vst.msk [vmem:[#allocation2 + $0x70] sm:$0xff] %vm40_vm0, %v605_v14  ;;  %v606_v17 = vadd.f32 %v1932_v15, %v89_v12  ;;  %2051 = vmatprep.mubr.msk.f32.mxu1 %vm40_vm0, %v709_v16  ;;  %v100_v16 = vld [vmem:[#allocation2 + $0xd0] sm:$0xff] }
 0x146   :  { %v710_v18 = vld [vmem:[#allocation2 + $0x68] sm:$0xff] }
 0x147   :  { %639 = vst.msk [vmem:[#allocation2 + $0x78] sm:$0xff] %vm40_vm0, %v606_v17  ;;  %v1933_v19 = vpop.f32.mrb[32].mxu0  ;;  %2052 = vmatmul.mubr.msk.f32.gmra.mrb[12].mxu1 %vm40_vm0, %v710_v18 }
 0x148   :  { %v1934_v21 = vpop.f32.mrb[33].mxu0 }
 0x149   :  { %v1935_v22 = vadd.f32 %v1934_v21, %v1933_v19  ;;  %v1936_v23 = vpop.f32.mrb[34].mxu0 }
 0x14a   :  { %v1937_v25 = vpop.f32.mrb[35].mxu0 }
 0x14b   :  { %v607_v26 = vadd.f32 %v1935_v22, %v90_v20  ;;  %v1938_v27 = vadd.f32 %v1937_v25, %v1936_v23  ;;  %v101_v20 = vld [vmem:[#allocation2 + $0xd8] sm:$0xff] }
 0x14c   :  { %v711_v28 = vld [vmem:[#allocation2 + $0x70] sm:$0xff] }
 0x14d   :  { %640 = vst.msk [vmem:[#allocation2 + $0x80] sm:$0xff] %vm40_vm0, %v607_v26  ;;  %v608_v29 = vadd.f32 %v1938_v27, %v91_v24  ;;  %2054 = vmatprep.mubr.msk.f32.mxu1 %vm40_vm0, %v711_v28  ;;  %v102_v28 = vld [vmem:[#allocation2 + $0xe0] sm:$0xff] }
 0x14e   :  { %v712_v30 = vld [vmem:[#allocation2 + $0x78] sm:$0xff] }
 0x14f   :  { %641 = vst.msk [vmem:[#allocation2 + $0x88] sm:$0xff] %vm40_vm0, %v608_v29  ;;  %v1939_v31 = vpop.f32.mrb[36].mxu0  ;;  %2055 = vmatmul.mubr.msk.f32.gmra.mrb[14].mxu1 %vm40_vm0, %v712_v30 }
 0x150   :  { %v1940_v33 = vpop.f32.mrb[37].mxu0 }
 0x151   :  { %v1941_v34 = vadd.f32 %v1940_v33, %v1939_v31  ;;  %v1942_v35 = vpop.f32.mrb[38].mxu0 }
 0x152   :  { %v1943_v37 = vpop.f32.mrb[39].mxu0 }
 0x153   :  { %v609_v38 = vadd.f32 %v1941_v34, %v92_v32  ;;  %v1944_v39 = vadd.f32 %v1943_v37, %v1942_v35  ;;  %v103_v32 = vld [vmem:[#allocation2 + $0xe8] sm:$0xff] }
 0x154   :  { %v713_v40 = vld [vmem:[#allocation2 + $0x80] sm:$0xff] }
 0x155   :  { %642 = vst.msk [vmem:[#allocation2 + $0x90] sm:$0xff] %vm40_vm0, %v609_v38  ;;  %v610_v41 = vadd.f32 %v1944_v39, %v93_v36  ;;  %2057 = vmatprep.mubr.msk.f32.mxu1 %vm40_vm0, %v713_v40  ;;  %v104_v40 = vld [vmem:[#allocation2 + $0xf0] sm:$0xff] }
 0x156   :  { %v714_v42 = vld [vmem:[#allocation2 + $0x88] sm:$0xff] }
 0x157   :  { %643 = vst.msk [vmem:[#allocation2 + $0x98] sm:$0xff] %vm40_vm0, %v610_v41  ;;  %v1945_v43 = vpop.f32.mrb[40].mxu0  ;;  %2058 = vmatmul.mubr.msk.f32.gmra.mrb[16].mxu1 %vm40_vm0, %v714_v42 }
 0x158   :  { %v1946_v45 = vpop.f32.mrb[41].mxu0 }
 0x159   :  { %v1947_v46 = vadd.f32 %v1946_v45, %v1945_v43  ;;  %v1948_v47 = vpop.f32.mrb[42].mxu0 }
 0x15a   :  { %v1949_v49 = vpop.f32.mrb[43].mxu0 }
 0x15b   :  { %v611_v50 = vadd.f32 %v1947_v46, %v94_v44  ;;  %v1950_v51 = vadd.f32 %v1949_v49, %v1948_v47  ;;  %v105_v44 = vld [vmem:[#allocation2 + $0xf8] sm:$0xff] }
 0x15c   :  { %v715_v52 = vld [vmem:[#allocation2 + $0x90] sm:$0xff] }
 0x15d   :  { %644 = vst.msk [vmem:[#allocation2 + $0xa0] sm:$0xff] %vm40_vm0, %v611_v50  ;;  %v612_v53 = vadd.f32 %v1950_v51, %v95_v48  ;;  %2060 = vmatprep.mubr.msk.f32.mxu1 %vm40_vm0, %v715_v52  ;;  %v2187_v52 = vld [vmem:[%s2635_s1] sm:$0xff]  }
 0x15e   :  { %v716_v54 = vld [vmem:[#allocation2 + $0x98] sm:$0xff] }
 0x15f   :  { %645 = vst.msk [vmem:[#allocation2 + $0xa8] sm:$0xff] %vm40_vm0, %v612_v53  ;;  %v1951_v55 = vpop.f32.mrb[44].mxu0  ;;  %2061 = vmatmul.mubr.msk.f32.gmra.mrb[18].mxu1 %vm40_vm0, %v716_v54  ;;  %v2188_v54 = vld [vmem:[%s2635_s1 + $0x8] sm:$0xff]  }
 0x160   :  { %v1952_v57 = vpop.f32.mrb[45].mxu0 }
 0x161   :  { %v1953_v58 = vadd.f32 %v1952_v57, %v1951_v55  ;;  %v1954_v59 = vpop.f32.mrb[46].mxu0  ;;  %v2189_v55 = vld [vmem:[%s2635_s1 + $0x10] sm:$0xff]   ;;  %v2191_v57 = vld [vmem:[%s2635_s1 + $0x20] sm:$0xff]  }
 0x162   :  { %v1955_v61 = vpop.f32.mrb[47].mxu0 }
 0x163   :  { %v613_v62 = vadd.f32 %v1953_v58, %v96_v56  ;;  %v1956_v63 = vadd.f32 %v1955_v61, %v1954_v59  ;;  %v2190_v56 = vld [vmem:[%s2635_s1 + $0x18] sm:$0xff]   ;;  %v2192_v58 = vld [vmem:[%s2635_s1 + $0x28] sm:$0xff]   ;;  %v2193_v59 = vld [vmem:[%s2635_s1 + $0x30] sm:$0xff]  }
 0x164   :  { %v717_v0 = vld [vmem:[#allocation2 + $0xa0] sm:$0xff] }
 0x165   :  { %646 = vst.msk [vmem:[#allocation2 + $0xb0] sm:$0xff] %vm40_vm0, %v613_v62  ;;  %v614_v1 = vadd.f32 %v1956_v63, %v97_v60  ;;  %2063 = vmatprep.mubr.msk.f32.mxu1 %vm40_vm0, %v717_v0  ;;  %v2194_v60 = vld [vmem:[%s2635_s1 + $0x38] sm:$0xff]   ;;  %v2195_v61 = vld [vmem:[%s2635_s1 + $0x40] sm:$0xff]   ;;  %v2196_v62 = vld [vmem:[%s2635_s1 + $0x48] sm:$0xff]  }
 0x166   :  { %v718_v2 = vld [vmem:[#allocation2 + $0xa8] sm:$0xff]  ;;  %v2197_v63 = vld [vmem:[%s2635_s1 + $0x50] sm:$0xff]   ;;  %v2198_v0 = vld [vmem:[%s2635_s1 + $0x58] sm:$0xff]  }
 0x167   :  { %647 = vst.msk [vmem:[#allocation2 + $0xb8] sm:$0xff] %vm40_vm0, %v614_v1  ;;  %v1957_v3 = vpop.f32.mrb[48].mxu0  ;;  %2064 = vmatmul.mubr.msk.f32.gmra.mrb[20].mxu1 %vm40_vm0, %v718_v2  ;;  %v2199_v1 = vld [vmem:[%s2635_s1 + $0x60] sm:$0xff]   ;;  %v2200_v2 = vld [vmem:[%s2635_s1 + $0x68] sm:$0xff]  }
 0x168   :  { %v1958_v5 = vpop.f32.mrb[49].mxu0 }
 0x169   :  { %v1959_v6 = vadd.f32 %v1958_v5, %v1957_v3  ;;  %v1960_v7 = vpop.f32.mrb[50].mxu0  ;;  %v2201_v3 = vld [vmem:[%s2635_s1 + $0x70] sm:$0xff]  }
 0x16a   :  { %v1961_v9 = vpop.f32.mrb[51].mxu0 }
 0x16b   :  { %v615_v10 = vadd.f32 %v1959_v6, %v98_v4  ;;  %v1962_v11 = vadd.f32 %v1961_v9, %v1960_v7  ;;  %v2202_v4 = vld [vmem:[%s2635_s1 + $0x78] sm:$0xff]  }
 0x16c   :  { %v719_v12 = vld [vmem:[#allocation2 + $0xb0] sm:$0xff] }
 0x16d   :  { %648 = vst.msk [vmem:[#allocation2 + $0xc0] sm:$0xff] %vm40_vm0, %v615_v10  ;;  %v616_v13 = vadd.f32 %v1962_v11, %v99_v8  ;;  %2066 = vmatprep.mubr.msk.f32.mxu1 %vm40_vm0, %v719_v12 }
 0x16e   :  { %v720_v14 = vld [vmem:[#allocation2 + $0xb8] sm:$0xff] }
 0x16f   :  { %649 = vst.msk [vmem:[#allocation2 + $0xc8] sm:$0xff] %vm40_vm0, %v616_v13  ;;  %v1963_v15 = vpop.f32.mrb[52].mxu0  ;;  %2067 = vmatmul.mubr.msk.f32.gmra.mrb[22].mxu1 %vm40_vm0, %v720_v14 }
 0x170   :  { %v1964_v17 = vpop.f32.mrb[53].mxu0 }
 0x171   :  { %v1965_v18 = vadd.f32 %v1964_v17, %v1963_v15  ;;  %v1966_v19 = vpop.f32.mrb[54].mxu0 }
 0x172   :  { %v1967_v21 = vpop.f32.mrb[55].mxu0 }
 0x173   :  { %v617_v22 = vadd.f32 %v1965_v18, %v100_v16  ;;  %v1968_v23 = vadd.f32 %v1967_v21, %v1966_v19 }
 0x174   :  { %v721_v24 = vld [vmem:[#allocation2 + $0xc0] sm:$0xff] }
 0x175   :  { %650 = vst.msk [vmem:[#allocation2 + $0xd0] sm:$0xff] %vm40_vm0, %v617_v22  ;;  %v618_v25 = vadd.f32 %v1968_v23, %v101_v20  ;;  %2069 = vmatprep.mubr.msk.f32.mxu1 %vm40_vm0, %v721_v24 }
 0x176   :  { %v722_v26 = vld [vmem:[#allocation2 + $0xc8] sm:$0xff] }
 0x177   :  { %651 = vst.msk [vmem:[#allocation2 + $0xd8] sm:$0xff] %vm40_vm0, %v618_v25  ;;  %v1969_v27 = vpop.f32.mrb[56].mxu0  ;;  %2070 = vmatmul.mubr.msk.f32.gmra.mrb[24].mxu1 %vm40_vm0, %v722_v26 }
 0x178   :  { %v1970_v29 = vpop.f32.mrb[57].mxu0 }
 0x179   :  { %v1971_v30 = vadd.f32 %v1970_v29, %v1969_v27  ;;  %v1972_v31 = vpop.f32.mrb[58].mxu0 }
 0x17a   :  { %v1973_v33 = vpop.f32.mrb[59].mxu0 }
 0x17b   :  { %v619_v34 = vadd.f32 %v1971_v30, %v102_v28  ;;  %v1974_v35 = vadd.f32 %v1973_v33, %v1972_v31 }
 0x17c   :  { %v723_v36 = vld [vmem:[#allocation2 + $0xd0] sm:$0xff] }
 0x17d   :  { %652 = vst.msk [vmem:[#allocation2 + $0xe0] sm:$0xff] %vm40_vm0, %v619_v34  ;;  %v620_v37 = vadd.f32 %v1974_v35, %v103_v32  ;;  %2072 = vmatprep.mubr.msk.f32.mxu1 %vm40_vm0, %v723_v36 }
 0x17e   :  { %v724_v38 = vld [vmem:[#allocation2 + $0xd8] sm:$0xff] }
 0x17f   :  { %653 = vst.msk [vmem:[#allocation2 + $0xe8] sm:$0xff] %vm40_vm0, %v620_v37  ;;  %v1975_v39 = vpop.f32.mrb[60].mxu0  ;;  %2073 = vmatmul.mubr.msk.f32.gmra.mrb[26].mxu1 %vm40_vm0, %v724_v38  ;;  %v2565_v38 = vld [vmem:[%s2638_s4] ss:$0 sm:$0xff]  ;;  %s2255_s4 = smov [#allocation6]  }
 0x180   :  { %v1976_v41 = vpop.f32.mrb[61].mxu0  ;;  %s1581_s19 = sshll.u32 %s2255_s4, 4  ;;  %s1582_s19 = int_to_ptr.vmem [resolvable:$true] %s1581_s19 }
 0x181   :  { %v1977_v42 = vadd.f32 %v1976_v41, %v1975_v39  ;;  %v1978_v43 = vpop.f32.mrb[62].mxu0  ;;  %s2225_s20 = scalar_lea.vmem %s1582_s19, 2048  ;;  %p2230_p9 = scmp.lt.s32.totalorder %s1582_s19, %s1582_s19 }
 0x182   :  { %v1979_v45 = vpop.f32.mrb[63].mxu0  ;;  %p2226_p8 = scmp.ne.s32.totalorder %s1582_s19, %s2225_s20  ;;  %p2231_p10 = scmp.lt.s32.totalorder %s2225_s20, %s2225_s20 }
 0x183   :  { %v621_v46 = vadd.f32 %v1977_v42, %v104_v40  ;;  %v1980_v47 = vadd.f32 %v1979_v45, %v1978_v43 }
 0x184   :  { %v725_v48 = vld [vmem:[#allocation2 + $0xe0] sm:$0xff]  ;;  %p2232_p11 = por %p2231_p10, %p2230_p9 }
 0x185   :  { %654 = vst.msk [vmem:[#allocation2 + $0xf0] sm:$0xff] %vm40_vm0, %v621_v46  ;;  %v622_v49 = vadd.f32 %v1980_v47, %v105_v44  ;;  %2075 = vmatprep.mubr.msk.f32.mxu1 %vm40_vm0, %v725_v48 }
 0x186   :  { %v726_v50 = vld [vmem:[#allocation2 + $0xe8] sm:$0xff]  ;;  %p2233_p12 = pnand %p2232_p11, %p2226_p8 }
 0x187   :  { %655 = vst.msk [vmem:[#allocation2 + $0xf8] sm:$0xff] %vm40_vm0, %v622_v49  ;;  %2076 = vmatmul.mubr.msk.f32.gmra.mrb[28].mxu1 %vm40_vm0, %v726_v50 }
 0x18c   :  { %v727_v51 = vld [vmem:[#allocation2 + $0xf0] sm:$0xff] }
 0x18d   :  { %2078 = vmatprep.mubr.msk.f32.mxu1 %vm40_vm0, %v727_v51 }
 0x18e   :  { %v728_v53 = vld [vmem:[#allocation2 + $0xf8] sm:$0xff] }
 0x18f   :  { %2079 = vmatmul.mubr.msk.f32.gmra.mrb[30].mxu1 %vm40_vm0, %v728_v53 }
 0x190   :  { %2083 = vmatprep.mubr.msk.bf16.mxu1 %vm40_vm0, %v2187_v52 }
 0x193   :  { %2084 = vmatmul.mubr.msk.bf16.vlgmr.msra.gmra.mrb[32].mxu1 %vm40_vm0, %v2188_v54 }
 0x194   :  { %2087 = vmatprep.mubr.msk.bf16.mxu1 %vm40_vm0, %v2189_v55 }
 0x19b   :  { %2088 = vmatmul.mubr.msk.bf16.gmra.mrb[36].mxu1 %vm40_vm0, %v2190_v56 }
 0x19c   :  { %2091 = vmatprep.mubr.msk.bf16.mxu1 %vm40_vm0, %v2191_v57 }
 0x1a3   :  { %2092 = vmatmul.mubr.msk.bf16.gmra.mrb[40].mxu1 %vm40_vm0, %v2192_v58 }
 0x1a4   :  { %2095 = vmatprep.mubr.msk.bf16.mxu1 %vm40_vm0, %v2193_v59 }
 0x1ab   :  { %2096 = vmatmul.mubr.msk.bf16.gmra.mrb[44].mxu1 %vm40_vm0, %v2194_v60 }
 0x1ac   :  { %2099 = vmatprep.mubr.msk.bf16.mxu1 %vm40_vm0, %v2195_v61 }
 0x1b3   :  { %2100 = vmatmul.mubr.msk.bf16.gmra.mrb[48].mxu1 %vm40_vm0, %v2196_v62 }
 0x1b4   :  { %2103 = vmatprep.mubr.msk.bf16.mxu1 %vm40_vm0, %v2197_v63 }
 0x1bb   :  { %2104 = vmatmul.mubr.msk.bf16.gmra.mrb[52].mxu1 %vm40_vm0, %v2198_v0 }
 0x1bc   :  { %2107 = vmatprep.mubr.msk.bf16.mxu1 %vm40_vm0, %v2199_v1 }
 0x1c3   :  { %2108 = vmatmul.mubr.msk.bf16.gmra.mrb[56].mxu1 %vm40_vm0, %v2200_v2 }
 0x1c4   :  { %2111 = vmatprep.mubr.msk.bf16.mxu1 %vm40_vm0, %v2201_v3 }
 0x1cb   :  { %2112 = vmatmul.mubr.msk.bf16.gmra.mrb[60].mxu1 %vm40_vm0, %v2202_v4 }
 0x1ea   :  { %v2035_v5 = vpop.f32.mrb[0].mxu1 }
 0x1eb   :  { %v893_v6 = vpop.f32.mrb[1].mxu1 }
 0x1f2   :  { %v2038_v7 = vpop.f32.mrb[2].mxu1 }
 0x1f3   :  { %v903_v8 = vpop.f32.mrb[3].mxu1 }
 0x1fa   :  { %v2041_v9 = vpop.f32.mrb[4].mxu1 }
 0x1fb   :  { %v913_v10 = vpop.f32.mrb[5].mxu1 }
 0x202   :  { %v2044_v11 = vpop.f32.mrb[6].mxu1 }
 0x203   :  { %v923_v12 = vpop.f32.mrb[7].mxu1 }
 0x20a   :  { %v2516_v13 = vpop.f32.mrb[8].mxu1 }
 0x20b   :  { %v2518_v14 = vpop.f32.mrb[9].mxu1 }
 0x212   :  { %v2520_v15 = vpop.f32.mrb[10].mxu1 }
 0x213   :  { %v943_v16 = vpop.f32.mrb[11].mxu1 }
 0x21a   :  { %v2522_v17 = vpop.f32.mrb[12].mxu1 }
 0x21b   :  { %v2524_v18 = vpop.f32.mrb[13].mxu1 }
 0x222   :  { %v2526_v19 = vpop.f32.mrb[14].mxu1 }
 0x223   :  { %v2528_v20 = vpop.f32.mrb[15].mxu1 }
 0x22a   :  { %v2530_v21 = vpop.f32.mrb[16].mxu1 }
 0x22b   :  { %v2532_v22 = vpop.f32.mrb[17].mxu1 }
 0x232   :  { %v2534_v23 = vpop.f32.mrb[18].mxu1 }
 0x233   :  { %v2536_v24 = vpop.f32.mrb[19].mxu1 }
 0x23a   :  { %v2538_v25 = vpop.f32.mrb[20].mxu1 }
 0x23b   :  { %v2540_v26 = vpop.f32.mrb[21].mxu1 }
 0x242   :  { %v2542_v27 = vpop.f32.mrb[22].mxu1 }
 0x243   :  { %v2544_v28 = vpop.f32.mrb[23].mxu1 }
 0x24a   :  { %v2546_v29 = vpop.f32.mrb[24].mxu1 }
 0x24b   :  { %v2548_v30 = vpop.f32.mrb[25].mxu1 }
 0x252   :  { %v2550_v31 = vpop.f32.mrb[26].mxu1 }
 0x253   :  { %v2552_v32 = vpop.f32.mrb[27].mxu1 }
 0x25a   :  { %v2554_v33 = vpop.f32.mrb[28].mxu1 }
 0x25b   :  { %v2556_v34 = vpop.f32.mrb[29].mxu1 }
 0x262   :  { %v2558_v35 = vpop.f32.mrb[30].mxu1 }
 0x263   :  { %v2560_v36 = vpop.f32.mrb[31].mxu1 }
 0x266   :  { %v2085_v37 = vpop.f32.mrb[32].mxu1 }
 0x267   :  { %v1227_v39 = vadd.f32 %v2085_v37, %v903_v8  ;;  %v1218_v40 = vpop.f32.mrb[33].mxu1 }
 0x268   :  { %v1219_v41 = vadd.f32 %v1218_v40, %v893_v6  ;;  %v2086_v42 = vpop.f32.mrb[34].mxu1 }
 0x269   :  { %v1354_v43 = vadd.f32 %v2565_v38, %v1227_v39  ;;  %v1230_v44 = vadd.f32 %v2086_v42, %v2038_v7  ;;  %v1221_v45 = vpop.f32.mrb[35].mxu1 }
 0x26a   :  { %v1352_v46 = vadd.f32 %v2565_v38, %v1219_v41  ;;  %v1222_v47 = vadd.f32 %v2035_v5, %v1221_v45 }
 0x26b   :  { %v1355_v48 = vadd.f32 %v2565_v38, %v1230_v44  ;;  %v1386_v50 = vmax.f32 %v1354_v43, 0.0 }
 0x26c   :  { %v1353_v49 = vadd.f32 %v2565_v38, %v1222_v47  ;;  %v1384_v52 = vmax.f32 %v1352_v46, 0.0 }
 0x26d   :  { %v1387_v51 = vmax.f32 %v1355_v48, 0.0 }
 0x26e   :  { %v1385_v53 = vmax.f32 %v1353_v49, 0.0  ;;  %v2089_v54 = vpop.f32.mrb[36].mxu1 }
 0x26f   :  { %v1782_v55 = vpack.c.bf16 %v1387_v51, %v1386_v50  ;;  %v1243_v56 = vadd.f32 %v2089_v54, %v923_v12  ;;  %v1234_v57 = vpop.f32.mrb[37].mxu1 }
 0x270   :  { %v1777_v58 = vpack.c.bf16 %v1385_v53, %v1384_v52  ;;  %v1235_v59 = vadd.f32 %v1234_v57, %v913_v10  ;;  %v2090_v60 = vpop.f32.mrb[38].mxu1 }
 0x271   :  { %1854 = vst [vmem:[#allocation6 + $0x8] sm:$0xff] %v1782_v55   ;;  %v1358_v61 = vadd.f32 %v2565_v38, %v1243_v56  ;;  %v1246_v62 = vadd.f32 %v2090_v60, %v2044_v11  ;;  %v1237_v63 = vpop.f32.mrb[39].mxu1 }
 0x272   :  { %1778 = vst [vmem:[#allocation6] sm:$0xff] %v1777_v58   ;;  %v1356_v0 = vadd.f32 %v2565_v38, %v1235_v59  ;;  %v1238_v1 = vadd.f32 %v2041_v9, %v1237_v63 }
 0x273   :  { %v1359_v2 = vadd.f32 %v2565_v38, %v1246_v62  ;;  %v1390_v4 = vmax.f32 %v1358_v61, 0.0 }
 0x274   :  { %v1357_v3 = vadd.f32 %v2565_v38, %v1238_v1  ;;  %v1388_v6 = vmax.f32 %v1356_v0, 0.0 }
 0x275   :  { %v1391_v5 = vmax.f32 %v1359_v2, 0.0 }
 0x276   :  { %v1389_v7 = vmax.f32 %v1357_v3, 0.0  ;;  %v2093_v8 = vpop.f32.mrb[40].mxu1 }
 0x277   :  { %v1792_v10 = vpack.c.bf16 %v1391_v5, %v1390_v4  ;;  %v1259_v12 = vadd.f32 %v2093_v8, %v943_v16  ;;  %v1250_v37 = vpop.f32.mrb[41].mxu1 }
 0x278   :  { %v1787_v39 = vpack.c.bf16 %v1389_v7, %v1388_v6  ;;  %v1251_v11 = vadd.f32 %v1250_v37, %v2518_v14  ;;  %v2094_v40 = vpop.f32.mrb[42].mxu1 }
 0x279   :  { %1856 = vst [vmem:[#allocation6 + $0x18] sm:$0xff] %v1792_v10   ;;  %v1362_v41 = vadd.f32 %v2565_v38, %v1259_v12  ;;  %v1262_v9 = vadd.f32 %v2094_v40, %v2520_v15  ;;  %v1253_v42 = vpop.f32.mrb[43].mxu1 }
 0x27a   :  { %1855 = vst [vmem:[#allocation6 + $0x10] sm:$0xff] %v1787_v39   ;;  %v1360_v43 = vadd.f32 %v2565_v38, %v1251_v11  ;;  %v1254_v44 = vadd.f32 %v2516_v13, %v1253_v42 }
 0x27b   :  { %v1363_v45 = vadd.f32 %v2565_v38, %v1262_v9  ;;  %v1394_v46 = vmax.f32 %v1362_v41, 0.0 }
 0x27c   :  { %v1361_v16 = vadd.f32 %v2565_v38, %v1254_v44  ;;  %v1392_v48 = vmax.f32 %v1360_v43, 0.0 }
 0x27d   :  { %v1395_v47 = vmax.f32 %v1363_v45, 0.0 }
 0x27e   :  { %v1393_v14 = vmax.f32 %v1361_v16, 0.0  ;;  %v2097_v49 = vpop.f32.mrb[44].mxu1 }
 0x27f   :  { %v1802_v50 = vpack.c.bf16 %v1395_v47, %v1394_v46  ;;  %v1275_v51 = vadd.f32 %v2097_v49, %v2528_v20  ;;  %v1266_v52 = vpop.f32.mrb[45].mxu1 }
 0x280   :  { %v1797_v15 = vpack.c.bf16 %v1393_v14, %v1392_v48  ;;  %v1267_v53 = vadd.f32 %v1266_v52, %v2524_v18  ;;  %v2098_v54 = vpop.f32.mrb[46].mxu1 }
 0x281   :  { %1858 = vst [vmem:[#allocation6 + $0x28] sm:$0xff] %v1802_v50   ;;  %v1366_v13 = vadd.f32 %v2565_v38, %v1275_v51  ;;  %v1278_v55 = vadd.f32 %v2098_v54, %v2526_v19  ;;  %v1269_v56 = vpop.f32.mrb[47].mxu1 }
 0x282   :  { %1857 = vst [vmem:[#allocation6 + $0x20] sm:$0xff] %v1797_v15   ;;  %v1364_v57 = vadd.f32 %v2565_v38, %v1267_v53  ;;  %v1270_v58 = vadd.f32 %v2522_v17, %v1269_v56 }
 0x283   :  { %v1367_v59 = vadd.f32 %v2565_v38, %v1278_v55  ;;  %v1398_v60 = vmax.f32 %v1366_v13, 0.0 }
 0x284   :  { %v1365_v20 = vadd.f32 %v2565_v38, %v1270_v58  ;;  %v1396_v62 = vmax.f32 %v1364_v57, 0.0 }
 0x285   :  { %v1399_v61 = vmax.f32 %v1367_v59, 0.0 }
 0x286   :  { %v1397_v18 = vmax.f32 %v1365_v20, 0.0  ;;  %v2101_v63 = vpop.f32.mrb[48].mxu1 }
 0x287   :  { %v1812_v0 = vpack.c.bf16 %v1399_v61, %v1398_v60  ;;  %v1291_v1 = vadd.f32 %v2101_v63, %v2536_v24  ;;  %v1282_v2 = vpop.f32.mrb[49].mxu1 }
 0x288   :  { %v1807_v19 = vpack.c.bf16 %v1397_v18, %v1396_v62  ;;  %v1283_v3 = vadd.f32 %v1282_v2, %v2532_v22  ;;  %v2102_v4 = vpop.f32.mrb[50].mxu1 }
 0x289   :  { %1860 = vst [vmem:[#allocation6 + $0x38] sm:$0xff] %v1812_v0   ;;  %v1370_v17 = vadd.f32 %v2565_v38, %v1291_v1  ;;  %v1294_v5 = vadd.f32 %v2102_v4, %v2534_v23  ;;  %v1285_v6 = vpop.f32.mrb[51].mxu1 }
 0x28a   :  { %1859 = vst [vmem:[#allocation6 + $0x30] sm:$0xff] %v1807_v19   ;;  %v1368_v7 = vadd.f32 %v2565_v38, %v1283_v3  ;;  %v1286_v8 = vadd.f32 %v2530_v21, %v1285_v6 }
 0x28b   :  { %v1371_v10 = vadd.f32 %v2565_v38, %v1294_v5  ;;  %v1402_v12 = vmax.f32 %v1370_v17, 0.0 }
 0x28c   :  { %v1369_v24 = vadd.f32 %v2565_v38, %v1286_v8  ;;  %v1400_v39 = vmax.f32 %v1368_v7, 0.0 }
 0x28d   :  { %v1403_v37 = vmax.f32 %v1371_v10, 0.0 }
 0x28e   :  { %v1401_v22 = vmax.f32 %v1369_v24, 0.0  ;;  %v2105_v11 = vpop.f32.mrb[52].mxu1 }
 0x28f   :  { %v1822_v40 = vpack.c.bf16 %v1403_v37, %v1402_v12  ;;  %v1307_v41 = vadd.f32 %v2105_v11, %v2544_v28  ;;  %v1298_v9 = vpop.f32.mrb[53].mxu1 }
 0x290   :  { %v1817_v23 = vpack.c.bf16 %v1401_v22, %v1400_v39  ;;  %v1299_v42 = vadd.f32 %v1298_v9, %v2540_v26  ;;  %v2106_v43 = vpop.f32.mrb[54].mxu1 }
 0x291   :  { %1862 = vst [vmem:[#allocation6 + $0x48] sm:$0xff] %v1822_v40   ;;  %v1374_v21 = vadd.f32 %v2565_v38, %v1307_v41  ;;  %v1310_v44 = vadd.f32 %v2106_v43, %v2542_v27  ;;  %v1301_v45 = vpop.f32.mrb[55].mxu1 }
 0x292   :  { %1861 = vst [vmem:[#allocation6 + $0x40] sm:$0xff] %v1817_v23   ;;  %v1372_v16 = vadd.f32 %v2565_v38, %v1299_v42  ;;  %v1302_v46 = vadd.f32 %v2538_v25, %v1301_v45 }
 0x293   :  { %v1375_v47 = vadd.f32 %v2565_v38, %v1310_v44  ;;  %v1406_v48 = vmax.f32 %v1374_v21, 0.0 }
 0x294   :  { %v1373_v28 = vadd.f32 %v2565_v38, %v1302_v46  ;;  %v1404_v49 = vmax.f32 %v1372_v16, 0.0 }
 0x295   :  { %v1407_v14 = vmax.f32 %v1375_v47, 0.0 }
 0x296   :  { %v1405_v26 = vmax.f32 %v1373_v28, 0.0  ;;  %v2109_v50 = vpop.f32.mrb[56].mxu1 }
 0x297   :  { %v1832_v51 = vpack.c.bf16 %v1407_v14, %v1406_v48  ;;  %v1323_v52 = vadd.f32 %v2109_v50, %v2552_v32  ;;  %v1314_v15 = vpop.f32.mrb[57].mxu1 }
 0x298   :  { %v1827_v27 = vpack.c.bf16 %v1405_v26, %v1404_v49  ;;  %v1315_v53 = vadd.f32 %v1314_v15, %v2548_v30  ;;  %v2110_v54 = vpop.f32.mrb[58].mxu1 }
 0x299   :  { %1864 = vst [vmem:[#allocation6 + $0x58] sm:$0xff] %v1832_v51   ;;  %v1378_v25 = vadd.f32 %v2565_v38, %v1323_v52  ;;  %v1326_v13 = vadd.f32 %v2110_v54, %v2550_v31  ;;  %v1317_v55 = vpop.f32.mrb[59].mxu1 }
 0x29a   :  { %1863 = vst [vmem:[#allocation6 + $0x50] sm:$0xff] %v1827_v27   ;;  %v1376_v56 = vadd.f32 %v2565_v38, %v1315_v53  ;;  %v1318_v57 = vadd.f32 %v2546_v29, %v1317_v55 }
 0x29b   :  { %v1379_v58 = vadd.f32 %v2565_v38, %v1326_v13  ;;  %v1410_v59 = vmax.f32 %v1378_v25, 0.0 }
 0x29c   :  { %v1377_v32 = vadd.f32 %v2565_v38, %v1318_v57  ;;  %v1408_v60 = vmax.f32 %v1376_v56, 0.0 }
 0x29d   :  { %v1411_v20 = vmax.f32 %v1379_v58, 0.0 }
 0x29e   :  { %v1409_v30 = vmax.f32 %v1377_v32, 0.0  ;;  %v2113_v61 = vpop.f32.mrb[60].mxu1 }
 0x29f   :  { %v1842_v62 = vpack.c.bf16 %v1411_v20, %v1410_v59  ;;  %v1339_v18 = vadd.f32 %v2113_v61, %v2560_v36  ;;  %v1330_v63 = vpop.f32.mrb[61].mxu1 }
 0x2a0   :  { %v1837_v31 = vpack.c.bf16 %v1409_v30, %v1408_v60  ;;  %v1331_v0 = vadd.f32 %v1330_v63, %v2556_v34  ;;  %v2114_v1 = vpop.f32.mrb[62].mxu1 }
 0x2a1   :  { %1866 = vst [vmem:[#allocation6 + $0x68] sm:$0xff] %v1842_v62   ;;  %v1382_v29 = vadd.f32 %v2565_v38, %v1339_v18  ;;  %v1342_v2 = vadd.f32 %v2114_v1, %v2558_v35  ;;  %v1333_v19 = vpop.f32.mrb[63].mxu1 }
 0x2a2   :  { %1865 = vst [vmem:[#allocation6 + $0x60] sm:$0xff] %v1837_v31   ;;  %v1380_v3 = vadd.f32 %v2565_v38, %v1331_v0  ;;  %v1334_v4 = vadd.f32 %v2554_v33, %v1333_v19 }
 0x2a3   :  { %v1383_v17 = vadd.f32 %v2565_v38, %v1342_v2  ;;  %v1414_v5 = vmax.f32 %v1382_v29, 0.0 }
 0x2a4   :  { %v1381_v36 = vadd.f32 %v2565_v38, %v1334_v4  ;;  %v1412_v6 = vmax.f32 %v1380_v3, 0.0 }
 0x2a5   :  { %v1415_v34 = vmax.f32 %v1383_v17, 0.0 }
 0x2a6   :  { %v1413_v7 = vmax.f32 %v1381_v36, 0.0 }
 0x2a7   :  { %v1852_v8 = vpack.c.bf16 %v1415_v34, %v1414_v5 }
 0x2a8   :  { %v1847_v10 = vpack.c.bf16 %v1413_v7, %v1412_v6 }
 0x2a9   :  { %1868 = vst [vmem:[#allocation6 + $0x78] sm:$0xff] %v1852_v8  }
 0x2aa   :  { %1867 = vst [vmem:[#allocation6 + $0x70] sm:$0xff] %v1847_v10  }
 0x2ab   :  { %2236 = shalt.err (!%p2233_p12)
}
 0x2ac   :  { %s2237_s23 = scalar_lea.hbm %s2639_s5, 2048 }
 0x2ad   :  { %p2238_p13 = scmp.ne.s32.totalorder %s2639_s5, %s2237_s23  ;;  %p2241_p0 = scmp.lt.u32.totalorder %s2237_s23, %s2639_s5 }
 0x2af   :  { %p2243_p1 = pnand %p2241_p0, %p2238_p13 }
 0x2b1   :  { %2246 = shalt.err (!%p2243_p1)
}
 0x2b2   :  { %s2256_s28 = smov 64   ;;  %s2257_s29 = smov 4  }
 0x2b3   :  { %1587 = dma.vmem_to_hbm [thread:$0]  %s1582_s19, 2048, %s2639_s5, [#allocation5], %s2256_s28, %s2256_s28, %s2257_s29  }
 0x2b4   :  { %2249 = dma.done.wait [#allocation5], 2048  }
 0x2b5   :  { %2250 = vsyncadd [#allocation5], 4294965248 }
 0x2b6   :  { %1591 = vsyncpa [#allocation4], 1 }
 0x2b7   :  { %1592 = vsyncpa [#allocation5], 1 }

</bundles_post_ra>
